<compile_context>
chip_gen: v6e
topology: v6e:2x2x1
jax: 0.10.0
libtpu: 0.0.40
codegen_flags: <defaults>
</compile_context>

<pallas_src>
import jax
import jax.numpy as jnp
from jax.experimental import pallas as pl
from jax.experimental.pallas import tpu as pltpu

HID = 128          # hidden width
NPAD = 128         # lane-padded fused-head width (cols: 0,1 = probs, 2 = value)

# packed-parameter row layout (sublane-aligned offsets), total rows = 152 (19*8)
_W1_R0, _W1_R1 = 0, 4          # w1      : rows 0:4    -> (4, 128)
_B1_ROW = 8                    # b1      : row  8      -> (128,)
_WH_R0, _WH_R1 = 16, 144       # w_heads : rows 16:144 -> (128, 128)
_BH_ROW = 144                  # b_heads : row  144    -> (128,)
_P_ROWS = 152


def policy_net_kernel(x_ref, p_ref, out_ref):
    x = x_ref[...]                                  # (TB, 4)
    w1 = p_ref[_W1_R0:_W1_R1, :]                    # (4, 128)
    b1 = p_ref[_B1_ROW:_B1_ROW + 1, :]              # (1, 128)
    wh = p_ref[_WH_R0:_WH_R1, :]                    # (128, 128) fused heads
    bh = p_ref[_BH_ROW:_BH_ROW + 1, :]              # (1, 128)

    # fc1 -> dropout (eval mode: identity) -> relu
    h = jnp.dot(x, w1, preferred_element_type=jnp.float32) + b1
    h = jnp.maximum(h, 0.0)

    # fused action + value heads: one lane-dense MXU matmul
    y = jnp.dot(h, wh, preferred_element_type=jnp.float32) + bh   # (TB, 128)

    la = y[:, 0:1]
    lb = y[:, 1:2]
    value = y[:, 2:3]

    # 2-class softmax == sigmoid of the logit difference (numerically stable)
    d = la - lb
    z = jnp.exp(-jnp.abs(d))
    inv = 1.0 / (1.0 + z)
    p0 = jnp.where(d >= 0, inv, z * inv)
    p1 = 1.0 - p0

    # assemble single lane-dense output slab: [p0 | p1 | value | zeros]
    lane = jax.lax.broadcasted_iota(jnp.int32, y.shape, 1)
    out = jnp.where(lane == 0, p0,
          jnp.where(lane == 1, p1,
          jnp.where(lane == 2, value, 0.0)))
    out_ref[...] = out


def pack_params(w1, b1, wa, ba, wv, bv):
    """Pack all parameters into one lane-dense (152, 128) f32 array."""
    p = jnp.zeros((_P_ROWS, NPAD), jnp.float32)
    p = p.at[_W1_R0:_W1_R1, :].set(w1)                     # fc1 weight (4,128)
    p = p.at[_B1_ROW, :].set(b1.reshape(-1))               # fc1 bias
    p = p.at[_WH_R0:_WH_R1, 0:2].set(wa)                   # action head weight
    p = p.at[_WH_R0:_WH_R1, 2:3].set(wv[:HID, :])          # value head weight (first 128 rows)
    p = p.at[_BH_ROW, 0:2].set(ba.reshape(-1))             # action head bias
    p = p.at[_BH_ROW, 2].set(bv.reshape(-1)[0])            # value head bias
    return p


def policy_net_forward(x, params):
    B, F = x.shape
    TB = B if B <= 512 else 512          # full-array tile for small B, else 512 (mult. of 8)
    grid = (pl.cdiv(B, TB),)

    out = pl.pallas_call(
        policy_net_kernel,
        out_shape=jax.ShapeDtypeStruct((B, NPAD), jnp.float32),
        grid_spec=pltpu.PrefetchScalarGridSpec(
            num_scalar_prefetch=0,
            grid=grid,
            in_specs=[
                pl.BlockSpec((TB, F), lambda i: (i, 0)),          # x tile
                pl.BlockSpec((_P_ROWS, NPAD), lambda i: (0, 0)),  # packed params (resident)
            ],
            out_specs=pl.BlockSpec((TB, NPAD), lambda i: (i, 0)),
        ),
        compiler_params=pltpu.CompilerParams(
            dimension_semantics=("parallel",)),
        cost_estimate=pl.CostEstimate(
            flops=2 * B * F * HID + 2 * B * HID * NPAD,
            transcendentals=B,
            bytes_accessed=(B * F + _P_ROWS * NPAD + B * NPAD) * 4),
    )(x, params)

    probs = out[:, 0:2]
    value = out[:, 2:3]
    return probs, value


def init_params(key):
    """Deterministic init mimicking PyTorch Linear (uniform +-1/sqrt(fan_in))."""
    k1, k2, k3, k4, k5, k6 = jax.random.split(key, 6)

    def uni(k, shape, fan_in):
        bound = 1.0 / jnp.sqrt(jnp.float32(fan_in))
        return jax.random.uniform(k, shape, jnp.float32, -bound, bound)

    # fc1: Linear(4, 128) stored as (in, out) = (4, 128)
    w1 = uni(k1, (4, 128), 4)
    b1 = uni(k2, (1, 128), 4)
    # action_head: Linear(128, 2) stored as (128, 2)
    wa = uni(k3, (128, 2), 128)
    ba = uni(k4, (1, 2), 128)
    # value_head: Linear(200, 1) stored as (200, 1); only first 128 rows usable
    wv = uni(k5, (200, 1), 200)
    bv = uni(k6, (1, 1), 200)
    return w1, b1, wa, ba, wv, bv


if __name__ == "__main__":
    key = jax.random.PRNGKey(0)
    kx, kp = jax.random.split(key)

    B = 8
    x = jax.random.normal(kx, (B, 4), jnp.float32)
    w1, b1, wa, ba, wv, bv = init_params(kp)
    params = pack_params(w1, b1, wa, ba, wv, bv)

    probs, value = policy_net_forward(x, params)
    jax.block_until_ready((probs, value))

    # sanity checks against plain-JAX reference
    h_ref = jnp.maximum(x @ w1 + b1, 0.0)
    probs_ref = jax.nn.softmax(h_ref @ wa + ba, axis=1)
    value_ref = h_ref @ wv[:HID, :] + bv
    assert probs.shape == (B, 2) and value.shape == (B, 1)
    assert jnp.allclose(probs, probs_ref, atol=1e-5)
    assert jnp.allclose(value, value_ref, atol=1e-5)
    assert jnp.allclose(jnp.sum(probs, axis=1), 1.0, atol=1e-5)

    print("KERNEL_OK")
</pallas_src>

<mosaic_0001>
module attributes {stable_mosaic.version = 11 : i64} {
  func.func @policy_net_kernel(%arg0: i32, %arg1: memref<8x4xf32, #tpu.memory_space<vmem>>, %arg2: memref<152x128xf32, #tpu.memory_space<vmem>>, %arg3: memref<8x128xf32, #tpu.memory_space<vmem>>) attributes {dimension_semantics = [#tpu.dimension_semantics<parallel>], iteration_bounds = array<i64: 1>, scalar_prefetch = 0 : i64, scratch_operands = 0 : i64, tpu.core_type = #tpu.core_type<tc>, window_params = [{transform_indices = @transform_0, window_bounds = array<i64: 8, 4>}, {pipeline_mode = #tpu.pipeline_mode<synchronous>, transform_indices = @transform_1, window_bounds = array<i64: 152, 128>}, {transform_indices = @transform_2, window_bounds = array<i64: 8, 128>}]} {
    %c0 = arith.constant 0 : index
    %c0_0 = arith.constant 0 : index
    %0 = vector.load %arg1[%c0, %c0_0] : memref<8x4xf32, #tpu.memory_space<vmem>>, vector<8x4xf32>
    %c0_1 = arith.constant 0 : index
    %c0_2 = arith.constant 0 : index
    %1 = vector.load %arg2[%c0_1, %c0_2] : memref<152x128xf32, #tpu.memory_space<vmem>>, vector<4x128xf32>
    %c8 = arith.constant 8 : index
    %c0_3 = arith.constant 0 : index
    %2 = vector.load %arg2[%c8, %c0_3] : memref<152x128xf32, #tpu.memory_space<vmem>>, vector<1x128xf32>
    %c16 = arith.constant 16 : index
    %c0_4 = arith.constant 0 : index
    %3 = vector.load %arg2[%c16, %c0_4] : memref<152x128xf32, #tpu.memory_space<vmem>>, vector<128x128xf32>
    %c144 = arith.constant 144 : index
    %c0_5 = arith.constant 0 : index
    %4 = vector.load %arg2[%c144, %c0_5] : memref<152x128xf32, #tpu.memory_space<vmem>>, vector<1x128xf32>
    %cst = arith.constant dense<0.000000e+00> : vector<8x128xf32>
    %5 = tpu.matmul %0, %1, %cst {dimension_numbers = #tpu.dot_dimension_numbers<[1], [0], [0], [1], [0, 0, 1, 1], [], []>} : vector<8x4xf32>, vector<4x128xf32>, vector<8x128xf32> -> vector<8x128xf32>
    %6 = vector.broadcast %2 : vector<1x128xf32> to vector<8x128xf32>
    %7 = arith.addf %5, %6 : vector<8x128xf32>
    %cst_6 = arith.constant 0.000000e+00 : f32
    %8 = vector.broadcast %cst_6 : f32 to vector<8x128xf32>
    %9 = arith.maximumf %7, %8 : vector<8x128xf32>
    %cst_7 = arith.constant dense<0.000000e+00> : vector<8x128xf32>
    %10 = tpu.matmul %9, %3, %cst_7 {dimension_numbers = #tpu.dot_dimension_numbers<[1], [0], [0], [1], [0, 0, 1, 1], [], []>} : vector<8x128xf32>, vector<128x128xf32>, vector<8x128xf32> -> vector<8x128xf32>
    %11 = vector.broadcast %4 : vector<1x128xf32> to vector<8x128xf32>
    %12 = arith.addf %10, %11 : vector<8x128xf32>
    %13 = vector.extract_strided_slice %12 {offsets = [0, 0], sizes = [8, 1], strides = [1, 1]} : vector<8x128xf32> to vector<8x1xf32>
    %14 = vector.extract_strided_slice %12 {offsets = [0, 1], sizes = [8, 1], strides = [1, 1]} : vector<8x128xf32> to vector<8x1xf32>
    %15 = vector.extract_strided_slice %12 {offsets = [0, 2], sizes = [8, 1], strides = [1, 1]} : vector<8x128xf32> to vector<8x1xf32>
    %16 = arith.subf %13, %14 : vector<8x1xf32>
    %17 = math.absf %16 : vector<8x1xf32>
    %cst_8 = arith.constant 0.000000e+00 : f32
    %18 = vector.broadcast %cst_8 : f32 to vector<8x1xf32>
    %19 = arith.subf %18, %17 : vector<8x1xf32>
    %20 = math.exp %19 : vector<8x1xf32>
    %cst_9 = arith.constant 1.000000e+00 : f32
    %21 = vector.broadcast %cst_9 : f32 to vector<8x1xf32>
    %22 = arith.addf %21, %20 : vector<8x1xf32>
    %cst_10 = arith.constant 1.000000e+00 : f32
    %23 = vector.broadcast %cst_10 : f32 to vector<8x1xf32>
    %24 = arith.divf %23, %22 : vector<8x1xf32>
    %cst_11 = arith.constant 0.000000e+00 : f32
    %25 = vector.broadcast %cst_11 : f32 to vector<8x1xf32>
    %26 = arith.cmpf oge, %16, %25 : vector<8x1xf32>
    %27 = arith.mulf %20, %24 : vector<8x1xf32>
    %28 = arith.select %26, %24, %27 : vector<8x1xi1>, vector<8x1xf32>
    %cst_12 = arith.constant 1.000000e+00 : f32
    %29 = vector.broadcast %cst_12 : f32 to vector<8x1xf32>
    %30 = arith.subf %29, %28 : vector<8x1xf32>
    %31 = tpu.iota {dimensions = array<i32: 1>} : vector<8x128xi32>
    %c0_i32 = arith.constant 0 : i32
    %32 = vector.broadcast %c0_i32 : i32 to vector<8x128xi32>
    %33 = arith.cmpi eq, %31, %32 : vector<8x128xi32>
    %c1_i32 = arith.constant 1 : i32
    %34 = vector.broadcast %c1_i32 : i32 to vector<8x128xi32>
    %35 = arith.cmpi eq, %31, %34 : vector<8x128xi32>
    %c2_i32 = arith.constant 2 : i32
    %36 = vector.broadcast %c2_i32 : i32 to vector<8x128xi32>
    %37 = arith.cmpi eq, %31, %36 : vector<8x128xi32>
    %cst_13 = arith.constant 0.000000e+00 : f32
    %38 = vector.shape_cast %15 : vector<8x1xf32> to vector<8x1xf32>
    %39 = vector.broadcast %38 : vector<8x1xf32> to vector<8x128xf32>
    %40 = vector.broadcast %cst_13 : f32 to vector<8x128xf32>
    %41 = arith.select %37, %39, %40 : vector<8x128xi1>, vector<8x128xf32>
    %42 = vector.shape_cast %30 : vector<8x1xf32> to vector<8x1xf32>
    %43 = vector.broadcast %42 : vector<8x1xf32> to vector<8x128xf32>
    %44 = arith.select %35, %43, %41 : vector<8x128xi1>, vector<8x128xf32>
    %45 = vector.shape_cast %28 : vector<8x1xf32> to vector<8x1xf32>
    %46 = vector.broadcast %45 : vector<8x1xf32> to vector<8x128xf32>
    %47 = arith.select %33, %46, %44 : vector<8x128xi1>, vector<8x128xf32>
    %c0_14 = arith.constant 0 : index
    %c0_15 = arith.constant 0 : index
    %48 = vector.load %arg3[%c0_14, %c0_15] : memref<8x128xf32, #tpu.memory_space<vmem>>, vector<8x128xf32>
    tpu.vector_store %arg3[%c0_14, %c0_15], %47 {strides = array<i32>} : memref<8x128xf32, #tpu.memory_space<vmem>>, vector<8x128xf32>,
    return
  }
  func.func @transform_0(%arg0: i32) -> (i32, i32) {
    %c0_i32 = arith.constant 0 : i32
    %c0_i32_0 = arith.constant 0 : i32
    return %arg0, %c0_i32 : i32, i32
  }
  func.func @transform_1(%arg0: i32) -> (i32, i32) {
    %c0_i32 = arith.constant 0 : i32
    %c0_i32_0 = arith.constant 0 : i32
    %c0_i32_1 = arith.constant 0 : i32
    return %c0_i32, %c0_i32_0 : i32, i32
  }
  func.func @transform_2(%arg0: i32) -> (i32, i32) {
    %c0_i32 = arith.constant 0 : i32
    %c0_i32_0 = arith.constant 0 : i32
    return %arg0, %c0_i32 : i32, i32
  }
}

</mosaic_0001>

<bundles_post_ra>
// kernel: tpu_custom_call.1
= control target key start
LH: loop header
LB: loop body
LE: loop exit
PB: predicated region body
PF: predicated region fallthrough
CT: control target
= control target key end

     0   :  { %7 = vsyncpa [#allocation3], 0  ;;  %s413_s0 = inlined_call_operand.vmem [shape: f32[8,4], index: 0, kind: input, shape index: {}]   ;;  %s414_s1 = inlined_call_operand.hbm [shape: f32[152,128], index: 1, kind: input, shape index: {}]   ;;  %s415_s2 = inlined_call_operand.hbm [shape: f32[8,128], index: 2, kind: output, shape index: {}]  }
   0x1   :  { %8 = vsyncpa [#allocation4], 0  ;;  %s380_s9 = smov [#allocation2]  }
   0x2   :  { %s16_s10 = sshll.u32 %s380_s9, 4  ;;  %s17_s10 = int_to_ptr.vmem [resolvable:$true] %s16_s10 }
   0x3   :  { %s344_s11 = scalar_lea.vmem %s17_s10, 2432  ;;  %p349_p1 = scmp.lt.s32.totalorder %s17_s10, %s17_s10 }
   0x4   :  { %p345_p0 = scmp.ne.s32.totalorder %s17_s10, %s344_s11  ;;  %p350_p2 = scmp.lt.s32.totalorder %s344_s11, %s344_s11 }
   0x6   :  { %p351_p3 = por %p350_p2, %p349_p1 }
   0x8   :  { %p352_p4 = pnand %p351_p3, %p345_p0 }
   0xa   :  { %355 = shalt.err (!%p352_p4)
}
   0xb   :  { %s381_s12 = smov 128   ;;  %s382_s13 = smov 8  }
   0xc   :  { %22 = dma.hbm_to_vmem [thread:$0]  %s414_s1, 2432, %s17_s10, [#allocation3], %s381_s12, %s381_s12, %s382_s13  }
   0xd   :  { %376 = dma.done.wait [#allocation3], 2432  }
   0xe   :  { %377 = vsyncadd [#allocation3], 4294964864  ;;  %v383_v0 = vmov 0.0   ;;  %vm384_vm0 = vmmov 0   ;;  %vm54_vm1 = vcmask 1043456   ;;  %vm50_vm2 = vcmask 31744  }
   0xf   :  { %280 = vmatprep.subr.mxu0 %v383_v0  ;;  %282 = vmatprep.mubr.msk.f32.mxu0 %vm384_vm0, %v383_v0  ;;  %v27_v1 = vld [vmem:[#allocation2] sm:$0xf]  ;;  %v44_v3 = vld [vmem:[#allocation2 + $0x88] sm:$0xff]  ;;  %v42_v5 = vld [vmem:[#allocation2 + $0x78] sm:$0xff]  ;;  %v385_v24 = vmov 2   ;;  %v387_v29 = vmov 0   ;;  %v219_v41 = vlaneseq }
  0x10   :  { %285 = vmatprep.subr.mxu1 %v383_v0  ;;  %317 = vmatprep.mubr.msk.f32.mxu1 %vm384_vm0, %v383_v0  ;;  %v26_v2 = vld [vmem:[%s413_s0] sm:$0xff]  ;;  %v41_v6 = vld [vmem:[#allocation2 + $0x70] sm:$0xff]  ;;  %v40_v7 = vld [vmem:[#allocation2 + $0x68] sm:$0xff]  ;;  %s386_s0 = smov 127   ;;  %s388_s1 = smov [#allocation5]  }
  0x11   :  { %281 = vmatpush3.msk.msra.mxu0 %vm54_vm1, %v27_v1  ;;  %286 = vmatpush3.msra.mxu1 %v44_v3  ;;  %v43_v4 = vld [vmem:[#allocation2 + $0x80] sm:$0xff]  ;;  %v38_v9 = vld [vmem:[#allocation2 + $0x58] sm:$0xff]  ;;  %v37_v10 = vld [vmem:[#allocation2 + $0x50] sm:$0xff]  ;;  %v220_v42 = vand.u32 127, %v219_v41  ;;  %s248_s18 = sshll.u32 %s388_s1, 4  ;;  %s249_s18 = int_to_ptr.vmem [resolvable:$true] %s248_s18 }
  0x12   :  { %283 = vmatmul.mubr.msk.f32.vlgmr.msra.gmra.mxu0 %vm50_vm2, %v26_v2  ;;  %287 = vmatprep.subr.mxu1 %v383_v0  ;;  %v39_v8 = vld [vmem:[#allocation2 + $0x60] sm:$0xff]  ;;  %v36_v11 = vld [vmem:[#allocation2 + $0x48] sm:$0xff]  ;;  %v34_v13 = vld [vmem:[#allocation2 + $0x38] sm:$0xff]  ;;  %s356_s19 = scalar_lea.vmem %s249_s18, 128  ;;  %p361_p6 = scmp.lt.s32.totalorder %s249_s18, %s249_s18 }
  0x13   :  { %288 = vmatpush3.msra.mxu1 %v43_v4  ;;  %v35_v12 = vld [vmem:[#allocation2 + $0x40] sm:$0xff]  ;;  %v33_v14 = vld [vmem:[#allocation2 + $0x30] sm:$0xff]  ;;  %v32_v15 = vld [vmem:[#allocation2 + $0x28] sm:$0xff]  ;;  %329 = vset.pattern.permute.xlu0 %v385_v24  ;;  %vm223_vm4 = vcmp.eq.s32.totalorder %v220_v42, 2  ;;  %vm222_vm5 = vcmp.eq.s32.totalorder %v220_v42, 1  ;;  %vm221_vm6 = vcmp.eq.s32.totalorder %v220_v42, 0  ;;  %p357_p5 = scmp.ne.s32.totalorder %s249_s18, %s356_s19  ;;  %p362_p7 = scmp.lt.s32.totalorder %s356_s19, %s356_s19 }
  0x14   :  { %289 = vmatprep.subr.mxu1 %v383_v0  ;;  %v31_v16 = vld [vmem:[#allocation2 + $0x20] sm:$0xff]  ;;  %v30_v17 = vld [vmem:[#allocation2 + $0x18] sm:$0xff]  ;;  %v29_v18 = vld [vmem:[#allocation2 + $0x10] sm:$0xff]  ;;  %330 = vset.pattern.permute.xlu1 %v387_v29 }
  0x15   :  { %290 = vmatpush3.msra.mxu1 %v42_v5  ;;  %v257_v19 = vld [vmem:[#allocation2 + $0x8] ss:$0 sm:$0xff]  ;;  %v260_v25 = vld [vmem:[#allocation2 + $0x90] ss:$0 sm:$0xff]  ;;  %p363_p8 = por %p362_p7, %p361_p6 }
  0x16   :  { %291 = vmatprep.subr.mxu1 %v383_v0 }
  0x17   :  { %292 = vmatpush3.msra.mxu1 %v41_v6  ;;  %p364_p9 = pnand %p363_p8, %p357_p5 }
  0x18   :  { %293 = vmatprep.subr.mxu1 %v383_v0 }
  0x19   :  { %294 = vmatpush3.msra.mxu1 %v40_v7 }
  0x1a   :  { %295 = vmatprep.subr.mxu1 %v383_v0 }
  0x1b   :  { %296 = vmatpush3.msra.mxu1 %v39_v8 }
  0x1c   :  { %297 = vmatprep.subr.mxu1 %v383_v0 }
  0x1d   :  { %298 = vmatpush3.msra.mxu1 %v38_v9 }
  0x1e   :  { %299 = vmatprep.subr.mxu1 %v383_v0 }
  0x1f   :  { %300 = vmatpush3.msra.mxu1 %v37_v10 }
  0x20   :  { %301 = vmatprep.subr.mxu1 %v383_v0 }
  0x21   :  { %302 = vmatpush3.msra.mxu1 %v36_v11 }
  0x22   :  { %303 = vmatprep.subr.mxu1 %v383_v0 }
  0x23   :  { %304 = vmatpush3.msra.mxu1 %v35_v12 }
  0x24   :  { %305 = vmatprep.subr.mxu1 %v383_v0 }
  0x25   :  { %306 = vmatpush3.msra.mxu1 %v34_v13 }
  0x26   :  { %307 = vmatprep.subr.mxu1 %v383_v0 }
  0x27   :  { %308 = vmatpush3.msra.mxu1 %v33_v14 }
  0x28   :  { %309 = vmatprep.subr.mxu1 %v383_v0 }
  0x29   :  { %310 = vmatpush3.msra.mxu1 %v32_v15 }
  0x2a   :  { %311 = vmatprep.subr.mxu1 %v383_v0 }
  0x2b   :  { %312 = vmatpush3.msra.mxu1 %v31_v16 }
  0x2c   :  { %313 = vmatprep.subr.mxu1 %v383_v0 }
  0x2d   :  { %314 = vmatpush3.msra.mxu1 %v30_v17 }
  0x2e   :  { %315 = vmatprep.subr.mxu1 %v383_v0 }
  0x2f   :  { %316 = vmatpush3.msra.mxu1 %v29_v18 }
  0xd2   :  { %v124_v20 = vpop.f32.mrf.mxu0 }
  0xd3   :  { %v125_v21 = vadd.f32 %v257_v19, %v124_v20 }
  0xd4   :  { %v284_v22 = vpop.f32.mrf.mxu0 }
  0xd5   :  { %v128_v23 = vmax.f32 %v125_v21, 0.0 }
  0xd7   :  { %318 = vmatmul.mubr.f32.vlgmr.msra.gmra.mxu1 %v128_v23 }
 0x197   :  { %v199_v26 = vpop.f32.mrf.mxu1 }
 0x198   :  { %v200_v27 = vadd.f32 %v260_v25, %v199_v26 }
 0x199   :  { %v319_v28 = vpop.f32.mrf.mxu1 }
 0x19a   :  { %204 = vrot.lane.b32.xlu0 %v200_v27, %s386_s0 }
 0x19e   :  { %225 = vperm.xlu0 %329, %v200_v27  }
 0x1a2   :  { %331 = vset.pattern.permute.xlu0 %v387_v29 }
 0x20c   :  { %v205_v30 = vpop.permute.xlu0 %204 }
 0x20d   :  { %v207_v31 = vsub.f32 %v200_v27, %v205_v30 }
 0x20f   :  { %v208_v32 = vand.u32 2147483647, %v207_v31  ;;  %vm215_vm3 = vcmp.ge.f32.partialorder %v207_v31, 0.0 }
 0x211   :  { %v209_v33 = vsub.f32 0.0, %v208_v32 }
 0x213   :  { %v210_v34 = vmul.f32 1.442695, %v209_v33 }
 0x215   :  { %332 = vpow2.f32 %v210_v34 }
 0x219   :  { %v226_v43 = vpop.permute.xlu0 %225 }
 0x21a   :  { %v228_v45 = vsel %vm223_vm4, %v226_v43, 0.0 }
 0x222   :  { %v333_v35 = vpop.eup %332 }
 0x223   :  { %v212_v36 = vadd.f32 1.0, %v333_v35 }
 0x225   :  { %334 = vrcp.f32 %v212_v36 }
 0x232   :  { %v335_v37 = vpop.eup %334 }
 0x233   :  { %v216_v38 = vmul.f32 %v335_v37, %v333_v35 }
 0x235   :  { %v217_v39 = vsel %vm215_vm3, %v335_v37, %v216_v38 }
 0x236   :  { %v218_v40 = vsub.f32 1.0, %v217_v39 }
 0x238   :  { %231 = vperm.xlu1 %330, %v218_v40  }
 0x23c   :  { %237 = vperm.xlu1 %330, %v217_v39  }
 0x2b3   :  { %v232_v44 = vpop.permute.xlu1 %231 }
 0x2b4   :  { %v234_v46 = vsel %vm222_vm5, %v232_v44, %v228_v45 }
 0x2b7   :  { %v238_v47 = vpop.permute.xlu1 %237 }
 0x2b8   :  { %v240_v48 = vsel %vm221_vm6, %v238_v47, %v234_v46 }
 0x2b9   :  { %241 = vst [vmem:[#allocation5] sm:$0xff] %v240_v48 }
 0x2ba   :  { %367 = shalt.err (!%p364_p9)
}
 0x2bb   :  { %251 = dma.vmem_to_hbm [thread:$0]  %s249_s18, 128, %s415_s2, [#allocation4]  }
 0x2bc   :  { %378 = dma.done.wait [#allocation4], 128  }
 0x2bd   :  { %379 = vsyncadd [#allocation4], 4294967168 }
 0x2be   :  { %255 = vsyncpa [#allocation3], 1 }
 0x2bf   :  { %256 = vsyncpa [#allocation4], 1 }

</bundles_post_ra>
